<compile_context>
chip_gen: v7x
topology: tpu7x:2x2x1
jax: 0.10.0
libtpu: 0.0.40
codegen_flags: <defaults>
</compile_context>

<pallas_src>
import functools

import jax
import jax.numpy as jnp
from jax.experimental import pallas as pl
from jax.experimental.pallas import tpu as pltpu


def mlp_kernel(x_ref, w1_ref, b1_ref, w2_ref, b2_ref, w3_ref, b3_ref, o_ref):
    # layer1 + ReLU (bf16 operands, f32 MXU accumulation, f32 bias)
    h = jnp.dot(x_ref[...], w1_ref[...], preferred_element_type=jnp.float32)
    h = jnp.maximum(h + b1_ref[...], 0.0)
    # layer2 + ReLU
    h = jnp.dot(h.astype(w2_ref.dtype), w2_ref[...],
                preferred_element_type=jnp.float32)
    h = jnp.maximum(h + b2_ref[...], 0.0)
    # layer3 (no activation)
    o = jnp.dot(h.astype(w3_ref.dtype), w3_ref[...],
                preferred_element_type=jnp.float32)
    o_ref[...] = (o + b3_ref[...]).astype(o_ref.dtype)


def _round_up(n, m):
    return ((n + m - 1) // m) * m


def prepare_params(w1, b1, w2, b2, w3, b3):
    """One-time param prep: pad feature dims to multiples of 128 (lane-dense)
    and cast weights to bf16 / biases to f32.  Returns (padded_params, dims)."""
    in_dim, hid = w1.shape
    nc = w3.shape[1]
    in_p = _round_up(in_dim, 128)
    hid_p = _round_up(hid, 128)
    nc_p = _round_up(nc, 128)

    def pad2(a, rows, cols, dtype):
        a = jnp.asarray(a, dtype).reshape(-1, a.shape[-1]) if a.ndim == 2 else \
            jnp.asarray(a, dtype).reshape(1, -1)
        return jnp.pad(a, ((0, rows - a.shape[0]), (0, cols - a.shape[1])))

    params = (
        pad2(w1, in_p, hid_p, jnp.bfloat16),
        pad2(b1, 1, hid_p, jnp.float32),
        pad2(w2, hid_p, hid_p, jnp.bfloat16),
        pad2(b2, 1, hid_p, jnp.float32),
        pad2(w3, hid_p, nc_p, jnp.bfloat16),
        pad2(b3, 1, nc_p, jnp.float32),
    )
    return params, (in_dim, hid, nc)


@functools.partial(jax.jit, static_argnames=("num_classes", "block_b"))
def mlp_forward(x, params, *, num_classes, block_b=128):
    w1_p, b1_p, w2_p, b2_p, w3_p, b3_p = params
    B, in_dim = x.shape
    in_p, hid_p = w1_p.shape
    nc_p = w3_p.shape[1]

    # Batch tiling: multiples of 16 rows (bf16 sublane packing).  block_b=128
    # keeps >= 2 grid steps for B > 128 so a "parallel" batch axis shards
    # across both v7x TensorCores.
    if B <= block_b:
        bb = _round_up(B, 16)
        B_p = bb
    else:
        bb = _round_up(block_b, 16)
        B_p = _round_up(B, bb)

    # Per-call wrapper work is only the activation pad/cast (weights are
    # already padded bf16 from prepare_params).
    x_p = jnp.pad(x.astype(jnp.bfloat16), ((0, B_p - B), (0, in_p - in_dim)))

    # Explicit scoped-VMEM budget: single-buffered resident weights + biases,
    # double-buffered x / out tiles, plus activation-scratch headroom.
    weight_bytes = 2 * (in_p * hid_p + hid_p * hid_p + hid_p * nc_p)   # bf16
    bias_bytes = 4 * (2 * hid_p + nc_p)                                # f32
    tile_bytes = 2 * (bb * in_p * 2 + bb * nc_p * 4) + 4 * bb * hid_p
    needed = weight_bytes + bias_bytes + tile_bytes
    vmem_limit = int(min(max(2 * needed, 16 << 20), 64 << 20))

    const = lambda i: (0, 0)
    resident = pl.Buffered(1)   # constant index_map -> never re-fetched

    out_p = pl.pallas_call(
        mlp_kernel,
        out_shape=jax.ShapeDtypeStruct((B_p, nc_p), jnp.float32),
        grid_spec=pl.GridSpec(
            grid=(B_p // bb,),
            in_specs=[
                pl.BlockSpec((bb, in_p), lambda i: (i, 0)),
                pl.BlockSpec((in_p, hid_p), const, pipeline_mode=resident),
                pl.BlockSpec((1, hid_p), const, pipeline_mode=resident),
                pl.BlockSpec((hid_p, hid_p), const, pipeline_mode=resident),
                pl.BlockSpec((1, hid_p), const, pipeline_mode=resident),
                pl.BlockSpec((hid_p, nc_p), const, pipeline_mode=resident),
                pl.BlockSpec((1, nc_p), const, pipeline_mode=resident),
            ],
            out_specs=pl.BlockSpec((bb, nc_p), lambda i: (i, 0)),
        ),
        compiler_params=pltpu.CompilerParams(
            dimension_semantics=("parallel",),
            vmem_limit_bytes=vmem_limit,
        ),
    )(x_p, w1_p, b1_p, w2_p, b2_p, w3_p, b3_p)

    # Slice away batch / class padding.
    return out_p[:B, :num_classes]


def init_linear(key, in_features, out_features):
    """Deterministic init mimicking nn.Linear's uniform(-1/sqrt(in), 1/sqrt(in)).
    Returns W already transposed to [in, out] and bias shaped [1, out]."""
    kw, kb = jax.random.split(key)
    bound = 1.0 / jnp.sqrt(jnp.float32(in_features))
    w = jax.random.uniform(kw, (in_features, out_features), jnp.float32, -bound, bound)
    b = jax.random.uniform(kb, (1, out_features), jnp.float32, -bound, bound)
    return w, b


if __name__ == "__main__":
    input_size, hidden_size, num_classes = 32, 32, 16
    batch = 16

    key = jax.random.PRNGKey(0)
    kx, k1, k2, k3 = jax.random.split(key, 4)

    x = jax.random.normal(kx, (batch, input_size), jnp.float32)
    w1, b1 = init_linear(k1, input_size, hidden_size)
    w2, b2 = init_linear(k2, hidden_size, hidden_size)
    w3, b3 = init_linear(k3, hidden_size, num_classes)

    # One-time weight padding / bf16 cast (amortized across all forward calls).
    params, (_, _, nc) = prepare_params(w1, b1, w2, b2, w3, b3)

    out = mlp_forward(x, params, num_classes=nc)
    out = jax.block_until_ready(out)

    # Pure-JAX f32 reference (loose tolerance: kernel uses bf16 MXU operands).
    h = jnp.maximum(x @ w1 + b1, 0.0)
    h = jnp.maximum(h @ w2 + b2, 0.0)
    ref = h @ w3 + b3
    assert out.shape == (batch, num_classes)
    assert jnp.allclose(out, ref, atol=5e-2, rtol=5e-2)

    print("KERNEL_OK")
</pallas_src>

<mosaic_0001>
module attributes {stable_mosaic.version = 11 : i64} {
  func.func @mlp_kernel(%arg0: i32, %arg1: memref<16x128xbf16, #tpu.memory_space<vmem>>, %arg2: memref<128x128xbf16, #tpu.memory_space<vmem>>, %arg3: memref<1x128xf32, #tpu.memory_space<vmem>>, %arg4: memref<128x128xbf16, #tpu.memory_space<vmem>>, %arg5: memref<1x128xf32, #tpu.memory_space<vmem>>, %arg6: memref<128x128xbf16, #tpu.memory_space<vmem>>, %arg7: memref<1x128xf32, #tpu.memory_space<vmem>>, %arg8: memref<16x128xf32, #tpu.memory_space<vmem>>) attributes {dimension_semantics = [#tpu.dimension_semantics<parallel>], iteration_bounds = array<i64: 1>, scalar_prefetch = 0 : i64, scratch_operands = 0 : i64, tpu.core_type = #tpu.core_type<tc>, window_params = [{transform_indices = @transform_0, window_bounds = array<i64: 16, 128>}, {pipeline_mode = #tpu.pipeline_mode<synchronous>, transform_indices = @transform_1, window_bounds = array<i64: 128, 128>}, {pipeline_mode = #tpu.pipeline_mode<synchronous>, transform_indices = @transform_2, window_bounds = array<i64: 1, 128>}, {pipeline_mode = #tpu.pipeline_mode<synchronous>, transform_indices = @transform_3, window_bounds = array<i64: 128, 128>}, {pipeline_mode = #tpu.pipeline_mode<synchronous>, transform_indices = @transform_4, window_bounds = array<i64: 1, 128>}, {pipeline_mode = #tpu.pipeline_mode<synchronous>, transform_indices = @transform_5, window_bounds = array<i64: 128, 128>}, {pipeline_mode = #tpu.pipeline_mode<synchronous>, transform_indices = @transform_6, window_bounds = array<i64: 1, 128>}, {transform_indices = @transform_7, window_bounds = array<i64: 16, 128>}]} {
    %c0 = arith.constant 0 : index
    %c0_0 = arith.constant 0 : index
    %0 = vector.load %arg1[%c0, %c0_0] : memref<16x128xbf16, #tpu.memory_space<vmem>>, vector<16x128xbf16>
    %c0_1 = arith.constant 0 : index
    %c0_2 = arith.constant 0 : index
    %1 = vector.load %arg2[%c0_1, %c0_2] : memref<128x128xbf16, #tpu.memory_space<vmem>>, vector<128x128xbf16>
    %cst = arith.constant dense<0.000000e+00> : vector<16x128xf32>
    %2 = tpu.matmul %0, %1, %cst {dimension_numbers = #tpu.dot_dimension_numbers<[1], [0], [0], [1], [0, 0, 1, 1], [], []>} : vector<16x128xbf16>, vector<128x128xbf16>, vector<16x128xf32> -> vector<16x128xf32>
    %c0_3 = arith.constant 0 : index
    %c0_4 = arith.constant 0 : index
    %3 = vector.load %arg3[%c0_3, %c0_4] : memref<1x128xf32, #tpu.memory_space<vmem>>, vector<1x128xf32>
    %4 = vector.broadcast %3 : vector<1x128xf32> to vector<16x128xf32>
    %5 = arith.addf %2, %4 : vector<16x128xf32>
    %cst_5 = arith.constant 0.000000e+00 : f32
    %6 = vector.broadcast %cst_5 : f32 to vector<16x128xf32>
    %7 = arith.maximumf %5, %6 : vector<16x128xf32>
    %8 = arith.truncf %7 : vector<16x128xf32> to vector<16x128xbf16>
    %c0_6 = arith.constant 0 : index
    %c0_7 = arith.constant 0 : index
    %9 = vector.load %arg4[%c0_6, %c0_7] : memref<128x128xbf16, #tpu.memory_space<vmem>>, vector<128x128xbf16>
    %cst_8 = arith.constant dense<0.000000e+00> : vector<16x128xf32>
    %10 = tpu.matmul %8, %9, %cst_8 {dimension_numbers = #tpu.dot_dimension_numbers<[1], [0], [0], [1], [0, 0, 1, 1], [], []>} : vector<16x128xbf16>, vector<128x128xbf16>, vector<16x128xf32> -> vector<16x128xf32>
    %c0_9 = arith.constant 0 : index
    %c0_10 = arith.constant 0 : index
    %11 = vector.load %arg5[%c0_9, %c0_10] : memref<1x128xf32, #tpu.memory_space<vmem>>, vector<1x128xf32>
    %12 = vector.broadcast %11 : vector<1x128xf32> to vector<16x128xf32>
    %13 = arith.addf %10, %12 : vector<16x128xf32>
    %cst_11 = arith.constant 0.000000e+00 : f32
    %14 = vector.broadcast %cst_11 : f32 to vector<16x128xf32>
    %15 = arith.maximumf %13, %14 : vector<16x128xf32>
    %16 = arith.truncf %15 : vector<16x128xf32> to vector<16x128xbf16>
    %c0_12 = arith.constant 0 : index
    %c0_13 = arith.constant 0 : index
    %17 = vector.load %arg6[%c0_12, %c0_13] : memref<128x128xbf16, #tpu.memory_space<vmem>>, vector<128x128xbf16>
    %cst_14 = arith.constant dense<0.000000e+00> : vector<16x128xf32>
    %18 = tpu.matmul %16, %17, %cst_14 {dimension_numbers = #tpu.dot_dimension_numbers<[1], [0], [0], [1], [0, 0, 1, 1], [], []>} : vector<16x128xbf16>, vector<128x128xbf16>, vector<16x128xf32> -> vector<16x128xf32>
    %c0_15 = arith.constant 0 : index
    %c0_16 = arith.constant 0 : index
    %19 = vector.load %arg7[%c0_15, %c0_16] : memref<1x128xf32, #tpu.memory_space<vmem>>, vector<1x128xf32>
    %20 = vector.broadcast %19 : vector<1x128xf32> to vector<16x128xf32>
    %21 = arith.addf %18, %20 : vector<16x128xf32>
    %c0_17 = arith.constant 0 : index
    %c0_18 = arith.constant 0 : index
    %22 = vector.load %arg8[%c0_17, %c0_18] : memref<16x128xf32, #tpu.memory_space<vmem>>, vector<16x128xf32>
    tpu.vector_store %arg8[%c0_17, %c0_18], %21 {strides = array<i32>} : memref<16x128xf32, #tpu.memory_space<vmem>>, vector<16x128xf32>,
    return
  }
  func.func @transform_0(%arg0: i32) -> (i32, i32) {
    %c0_i32 = arith.constant 0 : i32
    %c0_i32_0 = arith.constant 0 : i32
    return %arg0, %c0_i32 : i32, i32
  }
  func.func @transform_1(%arg0: i32) -> (i32, i32) {
    %c0_i32 = arith.constant 0 : i32
    %c0_i32_0 = arith.constant 0 : i32
    %c0_i32_1 = arith.constant 0 : i32
    return %c0_i32, %c0_i32_0 : i32, i32
  }
  func.func @transform_2(%arg0: i32) -> (i32, i32) {
    %c0_i32 = arith.constant 0 : i32
    %c0_i32_0 = arith.constant 0 : i32
    %c0_i32_1 = arith.constant 0 : i32
    return %c0_i32, %c0_i32_0 : i32, i32
  }
  func.func @transform_3(%arg0: i32) -> (i32, i32) {
    %c0_i32 = arith.constant 0 : i32
    %c0_i32_0 = arith.constant 0 : i32
    %c0_i32_1 = arith.constant 0 : i32
    return %c0_i32, %c0_i32_0 : i32, i32
  }
  func.func @transform_4(%arg0: i32) -> (i32, i32) {
    %c0_i32 = arith.constant 0 : i32
    %c0_i32_0 = arith.constant 0 : i32
    %c0_i32_1 = arith.constant 0 : i32
    return %c0_i32, %c0_i32_0 : i32, i32
  }
  func.func @transform_5(%arg0: i32) -> (i32, i32) {
    %c0_i32 = arith.constant 0 : i32
    %c0_i32_0 = arith.constant 0 : i32
    %c0_i32_1 = arith.constant 0 : i32
    return %c0_i32, %c0_i32_0 : i32, i32
  }
  func.func @transform_6(%arg0: i32) -> (i32, i32) {
    %c0_i32 = arith.constant 0 : i32
    %c0_i32_0 = arith.constant 0 : i32
    %c0_i32_1 = arith.constant 0 : i32
    return %c0_i32, %c0_i32_0 : i32, i32
  }
  func.func @transform_7(%arg0: i32) -> (i32, i32) {
    %c0_i32 = arith.constant 0 : i32
    %c0_i32_0 = arith.constant 0 : i32
    return %arg0, %c0_i32 : i32, i32
  }
}

</mosaic_0001>

<bundles_post_ra>
// kernel: mlp_forward.1
= control target key start
LH: loop header
LB: loop body
LE: loop exit
PB: predicated region body
PF: predicated region fallthrough
CT: control target
= control target key end

     0   :  { %12 = vsyncpa [#allocation3], 0  ;;  %s839_s0 = inlined_call_operand.vmem [shape: bf16[16,128], index: 0, kind: input, shape index: {}]   ;;  %s840_s1 = inlined_call_operand.hbm [shape: bf16[128,128], index: 1, kind: input, shape index: {}]   ;;  %s841_s2 = inlined_call_operand.vmem [shape: f32[1,128], index: 2, kind: input, shape index: {}]   ;;  %s842_s3 = inlined_call_operand.hbm [shape: bf16[128,128], index: 3, kind: input, shape index: {}]   ;;  %s843_s4 = inlined_call_operand.vmem [shape: f32[1,128], index: 4, kind: input, shape index: {}]   ;;  %s844_s5 = inlined_call_operand.hbm [shape: bf16[128,128], index: 5, kind: input, shape index: {}]   ;;  %s845_s6 = inlined_call_operand.vmem [shape: f32[1,128], index: 6, kind: input, shape index: {}]   ;;  %s846_s7 = inlined_call_operand.hbm [shape: f32[16,128], index: 7, kind: output, shape index: {}]  }
   0x1   :  { %13 = vsyncpa [#allocation6], 0 }
   0x2   :  { %14 = vsyncpa [#allocation4], 0  ;;  %s683_s24 = smov [#allocation5]   ;;  %s684_s26 = smov [#allocation2]  }
   0x3   :  { %s36_s25 = sshll.u32 %s683_s24, 4  ;;  %s22_s27 = sshll.u32 %s684_s26, 4  ;;  %s37_s25 = int_to_ptr.vmem [resolvable:$true] %s36_s25  ;;  %s733_s27 = int_to_ptr.vmem [resolvable:$true] %s22_s27 }
   0x4   :  { %s589_s30 = scalar_lea.hbm %s842_s3, 1024 }
   0x5   :  { %p590_p0 = scmp.ne.s32.totalorder %s842_s3, %s589_s30  ;;  %p593_p1 = scmp.lt.u32.totalorder %s589_s30, %s842_s3 }
   0x7   :  { %p595_p2 = pnand %p593_p1, %p590_p0 }
   0x9   :  { %598 = shalt.err (!%p595_p2)
}
   0xa   :  { %s599_s12 = scalar_lea.vmem %s37_s25, 1024  ;;  %p604_p4 = scmp.lt.s32.totalorder %s37_s25, %s37_s25 }
   0xb   :  { %p600_p3 = scmp.ne.s32.totalorder %s37_s25, %s599_s12  ;;  %p605_p5 = scmp.lt.s32.totalorder %s599_s12, %s599_s12 }
   0xd   :  { %p606_p6 = por %p605_p5, %p604_p4 }
   0xf   :  { %p607_p7 = pnand %p606_p6, %p600_p3 }
  0x11   :  { %610 = shalt.err (!%p607_p7)
}
  0x12   :  { %s685_s13 = smov 64   ;;  %s686_s14 = smov 4  }
  0x13   :  { %42 = dma.hbm_to_vmem [thread:$0]  %s842_s3, 1024, %s37_s25, [#allocation6], %s685_s13, %s685_s13, %s686_s14  }
  0x14   :  { %s611_s19 = scalar_lea.hbm %s840_s1, 1024 }
  0x15   :  { %p612_p8 = scmp.ne.s32.totalorder %s840_s1, %s611_s19  ;;  %p615_p9 = scmp.lt.u32.totalorder %s611_s19, %s840_s1 }
  0x17   :  { %p617_p10 = pnand %p615_p9, %p612_p8 }
  0x19   :  { %620 = shalt.err (!%p617_p10)
}
  0x1a   :  { %s621_s24 = scalar_lea.vmem %s733_s27, 1024  ;;  %p626_p12 = scmp.lt.s32.totalorder %s733_s27, %s733_s27 }
  0x1b   :  { %p622_p11 = scmp.ne.s32.totalorder %s733_s27, %s621_s24  ;;  %p627_p13 = scmp.lt.s32.totalorder %s621_s24, %s621_s24 }
  0x1d   :  { %p628_p0 = por %p627_p13, %p626_p12 }
  0x1f   :  { %p629_p1 = pnand %p628_p0, %p622_p11 }
  0x21   :  { %632 = shalt.err (!%p629_p1)
}
  0x22   :  { %28 = dma.hbm_to_vmem [thread:$0]  %s840_s1, 1024, %s733_s27, [#allocation3], %s685_s13, %s685_s13, %s686_s14  }
  0x23   :  { %s687_s26 = smov [#allocation7]   ;;  %s633_s8 = scalar_lea.hbm %s844_s5, 1024 }
  0x24   :  { %s50_s28 = sshll.u32 %s687_s26, 4  ;;  %p634_p2 = scmp.ne.s32.totalorder %s844_s5, %s633_s8  ;;  %s51_s28 = int_to_ptr.vmem [resolvable:$true] %s50_s28 }
  0x25   :  { %p637_p3 = scmp.lt.u32.totalorder %s633_s8, %s844_s5 }
  0x27   :  { %p639_p4 = pnand %p637_p3, %p634_p2 }
  0x29   :  { %642 = shalt.err (!%p639_p4)
}
  0x2a   :  { %s643_s15 = scalar_lea.vmem %s51_s28, 1024  ;;  %p648_p6 = scmp.lt.s32.totalorder %s51_s28, %s51_s28 }
  0x2b   :  { %p644_p5 = scmp.ne.s32.totalorder %s51_s28, %s643_s15  ;;  %p649_p7 = scmp.lt.s32.totalorder %s643_s15, %s643_s15 }
  0x2d   :  { %p650_p8 = por %p649_p7, %p648_p6 }
  0x2f   :  { %p651_p9 = pnand %p650_p8, %p644_p5 }
  0x31   :  { %654 = shalt.err (!%p651_p9)
}
  0x32   :  { %56 = dma.hbm_to_vmem [thread:$0]  %s844_s5, 1024, %s51_s28, [#allocation6], %s685_s13, %s685_s13, %s686_s14  }
  0x33   :  { %677 = dma.done.wait [#allocation3], 1024  }
  0x34   :  { %678 = vsyncadd [#allocation3], 4294966272 }
  0x35   :  { %679 = dma.done.wait [#allocation6], 2048  }
  0x36   :  { %680 = vsyncadd [#allocation6], 4294965248  ;;  %v688_v0 = vmov 0.0   ;;  %vm689_vm0 = vmmov 0   ;;  %v564_v1 = vld [vmem:[#allocation2] sm:$0xff]   ;;  %v565_v2 = vld [vmem:[#allocation2 + $0x8] sm:$0xff]  }
  0x37   :  { %494 = vmatprep.subr.bf16.mxu0 %v688_v0  ;;  %510 = vmatprep.mubr.msk.bf16.mxu0 %vm689_vm0, %v688_v0  ;;  %v566_v3 = vld [vmem:[#allocation2 + $0x10] sm:$0xff]   ;;  %v573_v4 = vld [vmem:[#allocation5] sm:$0xff]   ;;  %v567_v5 = vld [vmem:[#allocation2 + $0x18] sm:$0xff]   ;;  %s690_s19 = smov [#allocation8]  }
  0x38   :  { %514 = vmatprep.subr.bf16.mxu1 %v688_v0  ;;  %530 = vmatprep.mubr.msk.bf16.mxu1 %vm689_vm0, %v688_v0  ;;  %v574_v6 = vld [vmem:[#allocation5 + $0x8] sm:$0xff]   ;;  %v568_v7 = vld [vmem:[#allocation2 + $0x20] sm:$0xff]   ;;  %v575_v8 = vld [vmem:[#allocation5 + $0x10] sm:$0xff]   ;;  %s426_s20 = sshll.u32 %s690_s19, 4  ;;  %s427_s20 = int_to_ptr.vmem [resolvable:$true] %s426_s20 }
  0x39   :  { %495 = vmatpush3.bf16.msra.mxu0 %v564_v1  ;;  %515 = vmatpush3.bf16.msra.mxu1 %v573_v4  ;;  %v569_v9 = vld [vmem:[#allocation2 + $0x28] sm:$0xff]   ;;  %v576_v10 = vld [vmem:[#allocation5 + $0x18] sm:$0xff]   ;;  %v570_v11 = vld [vmem:[#allocation2 + $0x30] sm:$0xff]   ;;  %p660_p11 = scmp.lt.s32.totalorder %s427_s20, %s427_s20 }
  0x3a   :  { %496 = vmatprep.subr.bf16.mxu0 %v688_v0  ;;  %516 = vmatprep.subr.bf16.mxu1 %v688_v0  ;;  %v577_v12 = vld [vmem:[#allocation5 + $0x20] sm:$0xff]   ;;  %v571_v13 = vld [vmem:[#allocation2 + $0x38] sm:$0xff]   ;;  %v578_v14 = vld [vmem:[#allocation5 + $0x28] sm:$0xff]  }
  0x3b   :  { %v572_v15 = vld [vmem:[%s839_s0] sm:$0xff]   ;;  %v579_v16 = vld [vmem:[#allocation5 + $0x30] sm:$0xff]   ;;  %v580_v17 = vld [vmem:[#allocation5 + $0x38] sm:$0xff]  }
  0x3c   :  { %v581_v18 = vld [vmem:[#allocation7] sm:$0xff]   ;;  %v582_v19 = vld [vmem:[#allocation7 + $0x8] sm:$0xff]   ;;  %v583_v20 = vld [vmem:[#allocation7 + $0x10] sm:$0xff]  }
  0x3d   :  { %497 = vmatpush3.bf16.msra.mxu0 %v565_v2  ;;  %517 = vmatpush3.bf16.msra.mxu1 %v574_v6  ;;  %v584_v21 = vld [vmem:[#allocation7 + $0x18] sm:$0xff]   ;;  %v585_v22 = vld [vmem:[#allocation7 + $0x20] sm:$0xff]   ;;  %v586_v23 = vld [vmem:[#allocation7 + $0x28] sm:$0xff]  }
  0x3e   :  { %498 = vmatprep.subr.bf16.mxu0 %v688_v0  ;;  %518 = vmatprep.subr.bf16.mxu1 %v688_v0  ;;  %v439_v24 = vld [vmem:[%s841_s2] ss:$0 sm:$0xff]  ;;  %v587_v34 = vld [vmem:[#allocation7 + $0x30] sm:$0xff]   ;;  %v588_v35 = vld [vmem:[#allocation7 + $0x38] sm:$0xff]  }
  0x3f   :  { %v449_v36 = vld [vmem:[%s843_s4] ss:$0 sm:$0xff]  ;;  %s655_s4 = scalar_lea.vmem %s427_s20, 256 }
  0x40   :  { %v458_v46 = vld [vmem:[%s845_s6] ss:$0 sm:$0xff]  ;;  %p656_p10 = scmp.ne.s32.totalorder %s427_s20, %s655_s4  ;;  %p661_p12 = scmp.lt.s32.totalorder %s655_s4, %s655_s4 }
  0x41   :  { %499 = vmatpush3.bf16.msra.mxu0 %v566_v3  ;;  %519 = vmatpush3.bf16.msra.mxu1 %v575_v8 }
  0x42   :  { %500 = vmatprep.subr.bf16.mxu0 %v688_v0  ;;  %520 = vmatprep.subr.bf16.mxu1 %v688_v0  ;;  %p662_p13 = por %p661_p12, %p660_p11 }
  0x44   :  { %p663_p0 = pnand %p662_p13, %p656_p10 }
  0x45   :  { %501 = vmatpush3.bf16.msra.mxu0 %v567_v5  ;;  %521 = vmatpush3.bf16.msra.mxu1 %v576_v10 }
  0x46   :  { %502 = vmatprep.subr.bf16.mxu0 %v688_v0  ;;  %522 = vmatprep.subr.bf16.mxu1 %v688_v0 }
  0x49   :  { %503 = vmatpush3.bf16.msra.mxu0 %v568_v7  ;;  %523 = vmatpush3.bf16.msra.mxu1 %v577_v12 }
  0x4a   :  { %504 = vmatprep.subr.bf16.mxu0 %v688_v0  ;;  %524 = vmatprep.subr.bf16.mxu1 %v688_v0 }
  0x4d   :  { %505 = vmatpush3.bf16.msra.mxu0 %v569_v9  ;;  %525 = vmatpush3.bf16.msra.mxu1 %v578_v14 }
  0x4e   :  { %506 = vmatprep.subr.bf16.mxu0 %v688_v0  ;;  %526 = vmatprep.subr.bf16.mxu1 %v688_v0 }
  0x51   :  { %507 = vmatpush3.bf16.msra.mxu0 %v570_v11  ;;  %527 = vmatpush3.bf16.msra.mxu1 %v579_v16 }
  0x52   :  { %508 = vmatprep.subr.bf16.mxu0 %v688_v0  ;;  %528 = vmatprep.subr.bf16.mxu1 %v688_v0 }
  0x55   :  { %509 = vmatpush3.bf16.msra.mxu0 %v571_v13  ;;  %529 = vmatpush3.bf16.msra.mxu1 %v580_v17 }
  0x56   :  { %534 = vmatprep.subr.bf16.mxu0 %v688_v0 }
  0x58   :  { %511 = vmatmul.mubr.bf16.vlgmr.msra.gmra.mrb[0].mxu0 %v572_v15 }
  0x59   :  { %550 = vmatprep.mubr.msk.bf16.mxu0 %vm689_vm0, %v688_v0  ;;  %535 = vmatpush3.bf16.msra.mxu0 %v581_v18 }
  0x5a   :  { %536 = vmatprep.subr.bf16.mxu0 %v688_v0 }
  0x5d   :  { %537 = vmatpush3.bf16.msra.mxu0 %v582_v19 }
  0x5e   :  { %538 = vmatprep.subr.bf16.mxu0 %v688_v0 }
  0x61   :  { %539 = vmatpush3.bf16.msra.mxu0 %v583_v20 }
  0x62   :  { %540 = vmatprep.subr.bf16.mxu0 %v688_v0 }
  0x65   :  { %541 = vmatpush3.bf16.msra.mxu0 %v584_v21 }
  0x66   :  { %542 = vmatprep.subr.bf16.mxu0 %v688_v0 }
  0x69   :  { %543 = vmatpush3.bf16.msra.mxu0 %v585_v22 }
  0x6a   :  { %544 = vmatprep.subr.bf16.mxu0 %v688_v0 }
  0x6d   :  { %545 = vmatpush3.bf16.msra.mxu0 %v586_v23 }
  0x6e   :  { %546 = vmatprep.subr.bf16.mxu0 %v688_v0 }
  0x71   :  { %547 = vmatpush3.bf16.msra.mxu0 %v587_v34 }
  0x72   :  { %548 = vmatprep.subr.bf16.mxu0 %v688_v0 }
  0x75   :  { %549 = vmatpush3.bf16.msra.mxu0 %v588_v35 }
 0x12b   :  { %v182_v25 = vpop.f32.mrb[0].mxu0 }
 0x12c   :  { %v183_v26 = vadd.f32 %v439_v24, %v182_v25  ;;  %v512_v27 = vpop.f32.mrb[1].mxu0 }
 0x12d   :  { %v185_v28 = vpop.f32.mrb[2].mxu0 }
 0x12e   :  { %v186_v29 = vadd.f32 %v439_v24, %v185_v28  ;;  %v513_v30 = vpop.f32.mrb[3].mxu0  ;;  %v189_v31 = vmax.f32 %v183_v26, 0.0 }
 0x130   :  { %v190_v32 = vmax.f32 %v186_v29, 0.0 }
 0x132   :  { %v191_v33 = vpack.c.bf16 %v190_v32, %v189_v31 }
 0x134   :  { %531 = vmatmul.mubr.bf16.vlgmr.msra.gmra.mrb[0].mxu1 %v191_v33 }
 0x207   :  { %v297_v37 = vpop.f32.mrb[0].mxu1 }
 0x208   :  { %v298_v38 = vadd.f32 %v449_v36, %v297_v37  ;;  %v532_v39 = vpop.f32.mrb[1].mxu1 }
 0x209   :  { %v300_v40 = vpop.f32.mrb[2].mxu1 }
 0x20a   :  { %v301_v41 = vadd.f32 %v449_v36, %v300_v40  ;;  %v533_v42 = vpop.f32.mrb[3].mxu1  ;;  %v304_v43 = vmax.f32 %v298_v38, 0.0 }
 0x20c   :  { %v305_v44 = vmax.f32 %v301_v41, 0.0 }
 0x20e   :  { %v306_v45 = vpack.c.bf16 %v305_v44, %v304_v43 }
 0x210   :  { %551 = vmatmul.mubr.bf16.vlgmr.msra.gmra.mrb[4].mxu0 %v306_v45 }
 0x2e3   :  { %v412_v47 = vpop.f32.mrb[4].mxu0 }
 0x2e4   :  { %v413_v48 = vadd.f32 %v458_v46, %v412_v47  ;;  %v552_v49 = vpop.f32.mrb[5].mxu0 }
 0x2e5   :  { %v415_v50 = vpop.f32.mrb[6].mxu0 }
 0x2e6   :  { %419 = vst [vmem:[#allocation8] sm:$0xff] %v413_v48  ;;  %v416_v51 = vadd.f32 %v458_v46, %v415_v50  ;;  %v553_v52 = vpop.f32.mrb[7].mxu0 }
 0x2e8   :  { %420 = vst [vmem:[#allocation8 + $0x8] sm:$0xff] %v416_v51 }
 0x2e9   :  { %666 = shalt.err (!%p663_p0)
}
 0x2ea   :  { %s667_s22 = scalar_lea.hbm %s846_s7, 256 }
 0x2eb   :  { %p668_p1 = scmp.ne.s32.totalorder %s846_s7, %s667_s22  ;;  %p671_p2 = scmp.lt.u32.totalorder %s667_s22, %s846_s7 }
 0x2ed   :  { %p673_p3 = pnand %p671_p2, %p668_p1 }
 0x2ef   :  { %676 = shalt.err (!%p673_p3)
}
 0x2f0   :  { %s691_s26 = smov 128   ;;  %s692_s28 = smov 8  }
 0x2f1   :  { %432 = dma.vmem_to_hbm [thread:$0]  %s427_s20, 256, %s846_s7, [#allocation4], %s691_s26, %s691_s26, %s692_s28  }
 0x2f2   :  { %681 = dma.done.wait [#allocation4], 256  }
 0x2f3   :  { %682 = vsyncadd [#allocation4], 4294967040 }
 0x2f4   :  { %436 = vsyncpa [#allocation3], 1 }
 0x2f5   :  { %437 = vsyncpa [#allocation6], 1 }
 0x2f6   :  { %438 = vsyncpa [#allocation4], 1 }

</bundles_post_ra>
